<compile_context>
chip_gen: v7x
topology: tpu7x:2x2x1
jax: 0.10.0
libtpu: 0.0.40
codegen_flags: <defaults>
</compile_context>

<pallas_src>
import jax
import jax.numpy as jnp
from jax.experimental import pallas as pl
from jax.experimental.pallas import tpu as pltpu

P_GEM = 3.0          # GeM p (frozen in the module)
EPS_GEM = 1e-6
_LANE = 128
_VMEM_LIMIT = 32 * 1024 * 1024   # toy shapes; retune per-generation at real sizes


def _round_up(x, m):
    return (x + m - 1) // m * m


# ---------------------------------------------------------------------------
# Kernel 1: backbone stem stand-in (3x3 stride-2 conv + bias + ReLU) with the
# GeM partial reduction (clamp -> x^3 -> spatial mean) fused into its epilogue.
# One fused-K MXU matmul per image; output is only (N, 1, Cout_pad).
# ---------------------------------------------------------------------------
def conv3x3_s2_relu_gem_pool(x_nchw, w, b):
    """x: (N, Cin, H, W) f32, w: (Cout, Cin, 3, 3), b: (Cout,)
    -> (N, 1, cout_p) f32 holding  mean_{oh,ow} clamp(relu(conv)+..., eps)^p.
    Channels >= Cout hold exactly eps^p (killed later by zero fc rows)."""
    N, Cin, H, W = x_nchw.shape
    Cout = w.shape[0]
    assert H % 2 == 0 and W % 2 == 0, "stand-in stem assumes even H, W"
    OH, OW = H // 2, W // 2
    Hh, Wh = OH + 1, OW + 1            # parity-plane extents ((H + 2) // 2)
    cout_p = _round_up(Cout, _LANE)
    K = 9 * Cin                        # fused contraction depth

    # --- host-side prep: stride-2 parity (space-to-depth) split + kw views ---
    # plane p = 2*ph + pw holds xpad[:, ph::2, pw::2, :];
    # view d holds plane columns [d, d+OW) so each tap (kh, kw) becomes a
    # contiguous row window of a flat (Hh*OW, Cin) matrix -> no in-kernel
    # reshape and no host im2col of the full 9-tap window.
    x_nhwc = jnp.transpose(x_nchw, (0, 2, 3, 1))
    xp = jnp.pad(x_nhwc, ((0, 0), (1, 1), (1, 1), (0, 0)))
    planes = jnp.stack(
        [xp[:, ph::2, pw::2, :] for ph in (0, 1) for pw in (0, 1)],
        axis=1)                                          # (N, 4, Hh, Wh, Cin)
    views = jnp.stack(
        [planes[:, :, :, d:d + OW, :] for d in (0, 1)],
        axis=2)                                          # (N, 4, 2, Hh, OW, Cin)
    views = views.reshape(N, 4, 2, Hh * OW, Cin).astype(jnp.bfloat16)

    # fused tap weights (9*Cin, cout_p) bf16; K row index = (kh*3 + kw)*Cin + c
    w_fused = jnp.transpose(w, (2, 3, 1, 0)).reshape(K, Cout)
    w_fused = jnp.pad(w_fused, ((0, 0), (0, cout_p - Cout))).astype(jnp.bfloat16)
    b_row = jnp.pad(b, (0, cout_p - Cout)).reshape(1, cout_p).astype(jnp.float32)

    inv_hw = 1.0 / float(OH * OW)

    def kernel(views_ref, w_ref, b_ref, o_ref, win_ref):
        # views_ref: (1, 4, 2, Hh*OW, Cin) bf16   w_ref: (9*Cin, cout_p) bf16
        # b_ref: (1, cout_p) f32                  o_ref: (1, 1, cout_p) f32
        # win_ref: (OH*OW, 9*Cin) bf16 VMEM scratch (the assembled operand)

        # --- assemble the fused-K window operand: 9 static-slice copies ------
        t = 0
        for kh in range(3):
            ph, dh = kh % 2, kh // 2
            for kw in range(3):
                pw, dw = kw % 2, kw // 2
                p = 2 * ph + pw
                # rows [dh*OW, dh*OW + OH*OW) of view (p, dw) are exactly the
                # (oh, ow) -> plane[p][oh+dh, ow+dw] window, already flat.
                win_ref[:, pl.ds(t * Cin, Cin)] = views_ref[
                    0, p, dw, pl.ds(dh * OW, OH * OW), :]
                t += 1

        # --- single fused-K MXU matmul, f32 accumulation ---------------------
        acc = jnp.dot(win_ref[...], w_ref[...],
                      preferred_element_type=jnp.float32)   # (OH*OW, cout_p)

        # --- fused epilogue: bias + ReLU + GeM clamp/cube/spatial-mean -------
        # max(max(z, 0), eps) == max(z, eps) since eps > 0 (ReLU folded in).
        g = jnp.maximum(acc + b_ref[...], EPS_GEM)
        g3 = g * g * g                                       # pow(p=3), VPU only
        ones = jnp.full((1, OH * OW), inv_hw, jnp.float32)
        pooled = jnp.dot(ones, g3,                           # spatial mean on MXU
                         preferred_element_type=jnp.float32)  # (1, cout_p)
        o_ref[0] = pooled.astype(o_ref.dtype)

    return pl.pallas_call(
        kernel,
        out_shape=jax.ShapeDtypeStruct((N, 1, cout_p), jnp.float32),
        grid=(N,),
        in_specs=[
            pl.BlockSpec((1, 4, 2, Hh * OW, Cin), lambda n: (n, 0, 0, 0, 0)),
            pl.BlockSpec((K, cout_p), lambda n: (0, 0)),
            pl.BlockSpec((1, cout_p), lambda n: (0, 0)),
        ],
        out_specs=pl.BlockSpec((1, 1, cout_p), lambda n: (n, 0, 0)),
        scratch_shapes=[pltpu.VMEM((OH * OW, K), jnp.bfloat16)],
        compiler_params=pltpu.CompilerParams(
            dimension_semantics=("parallel",),
            vmem_limit_bytes=_VMEM_LIMIT),
    )(views, w_fused, b_row)


# ---------------------------------------------------------------------------
# Kernel 2: GeM root (pow(1/p) on the tiny pooled rows) + batched bf16 fc_emb.
# ---------------------------------------------------------------------------
def gem_root_fc_emb(pooled_p, w_emb, b_emb):
    """pooled_p: (N, 1, Cp) f32 (mean of clamped feat^p; channels >= C ~ eps^p),
    w_emb: (E, C) torch Linear layout, b_emb: (E,) -> (N, E) f32."""
    N, _, Cp = pooled_p.shape
    E, C = w_emb.shape
    assert C <= Cp
    e_p = _round_up(E, _LANE)

    # Pre-transposed, zero-padded, bf16 fc weight (Cp, e_p): padded input rows
    # (>= C) are zero so the eps-valued padded pooled channels contribute 0;
    # padded output columns (>= E) are sliced off below.
    w_t = jnp.pad(w_emb.T, ((0, Cp - C), (0, e_p - E))).astype(jnp.bfloat16)
    b_p = jnp.pad(b_emb, (0, e_p - E)).reshape(1, e_p).astype(jnp.float32)

    bt = N                      # batch tile: whole (small) batch per grid step
    inv_p = 1.0 / P_GEM

    def kernel(pooled_ref, w_ref, b_ref, o_ref):
        # pooled_ref: (bt, 1, Cp) f32  w_ref: (Cp, e_p) bf16
        # b_ref: (1, e_p) f32          o_ref: (bt, e_p) f32
        pooled = pooled_ref[:, 0, :]                    # (bt, Cp) f32
        root = pooled ** inv_p                          # GeM pow(1/p), tiny row, f32
        y = jnp.dot(root.astype(jnp.bfloat16), w_ref[...],
                    preferred_element_type=jnp.float32)  # (bt, e_p) on the MXU
        o_ref[...] = (y + b_ref[...]).astype(o_ref.dtype)

    out = pl.pallas_call(
        kernel,
        out_shape=jax.ShapeDtypeStruct((N, e_p), jnp.float32),
        grid=(N // bt,),
        in_specs=[
            pl.BlockSpec((bt, 1, Cp), lambda i: (i, 0, 0)),
            pl.BlockSpec((Cp, e_p), lambda i: (0, 0)),
            pl.BlockSpec((1, e_p), lambda i: (0, 0)),
        ],
        out_specs=pl.BlockSpec((bt, e_p), lambda i: (i, 0)),
        compiler_params=pltpu.CompilerParams(
            dimension_semantics=("arbitrary",),
            vmem_limit_bytes=_VMEM_LIMIT),
    )(pooled_p, w_t, b_p)
    return out[:, :E]


# ---------------------------------------------------------------------------
# Full forward
# ---------------------------------------------------------------------------
@jax.jit
def resnet_gem_forward(x, w_conv, b_conv, w_emb, b_emb):
    pooled_p = conv3x3_s2_relu_gem_pool(x, w_conv, b_conv)  # trunk + GeM^p mean
    return gem_root_fc_emb(pooled_p, w_emb, b_emb)          # pow(1/p) + fc_emb


def _reference_forward(x, w_conv, b_conv, w_emb, b_emb):
    """Pure-JAX (f32) reference of the same forward, for a sanity check."""
    y = jax.lax.conv_general_dilated(
        x, w_conv, window_strides=(2, 2), padding=((1, 1), (1, 1)),
        dimension_numbers=("NCHW", "OIHW", "NCHW"))
    y = jnp.maximum(y + b_conv[None, :, None, None], 0.0)
    g = jnp.maximum(y, EPS_GEM) ** P_GEM
    pooled = jnp.mean(g, axis=(2, 3)) ** (1.0 / P_GEM)
    return pooled @ w_emb.T + b_emb


if __name__ == "__main__":
    key = jax.random.PRNGKey(0)
    k1, k2, k3, k4, k5 = jax.random.split(key, 5)

    # small shapes consistent with the module
    N, Cin, H, W = 2, 4, 16, 16     # input image (NCHW)
    Cfeat = 32                      # backbone.fc.in_features stand-in
    emb_dim = 16                    # fc_emb output dim

    x = jax.random.normal(k1, (N, Cin, H, W), jnp.float32)
    w_conv = 0.1 * jax.random.normal(k2, (Cfeat, Cin, 3, 3), jnp.float32)
    b_conv = 0.1 * jax.random.normal(k3, (Cfeat,), jnp.float32)
    w_emb = 0.1 * jax.random.normal(k4, (emb_dim, Cfeat), jnp.float32)  # (out, in)
    b_emb = 0.1 * jax.random.normal(k5, (emb_dim,), jnp.float32)

    out = resnet_gem_forward(x, w_conv, b_conv, w_emb, b_emb)
    jax.block_until_ready(out)
    assert out.shape == (N, emb_dim)

    ref = _reference_forward(x, w_conv, b_conv, w_emb, b_emb)
    assert bool(jnp.allclose(out, ref, rtol=5e-2, atol=1e-2)), (
        float(jnp.max(jnp.abs(out - ref))))
    print("KERNEL_OK")
</pallas_src>

<mosaic_0001>
module attributes {stable_mosaic.version = 11 : i64} {
  func.func @kernel(%arg0: i32, %arg1: memref<2x1x128xf32, #tpu.memory_space<vmem>>, %arg2: memref<128x128xbf16, #tpu.memory_space<vmem>>, %arg3: memref<1x128xf32, #tpu.memory_space<vmem>>, %arg4: memref<2x128xf32, #tpu.memory_space<vmem>>) attributes {dimension_semantics = [#tpu.dimension_semantics<arbitrary>], iteration_bounds = array<i64: 1>, scalar_prefetch = 0 : i64, scratch_operands = 0 : i64, tpu.core_type = #tpu.core_type<tc>, window_params = [{transform_indices = @transform_0, window_bounds = array<i64: 2, 1, 128>}, {pipeline_mode = #tpu.pipeline_mode<synchronous>, transform_indices = @transform_1, window_bounds = array<i64: 128, 128>}, {pipeline_mode = #tpu.pipeline_mode<synchronous>, transform_indices = @transform_2, window_bounds = array<i64: 1, 128>}, {transform_indices = @transform_3, window_bounds = array<i64: 2, 128>}]} {
    %c0 = arith.constant 0 : index
    %c0_0 = arith.constant 0 : index
    %c0_1 = arith.constant 0 : index
    %0 = vector.load %arg1[%c0, %c0_0, %c0_1] : memref<2x1x128xf32, #tpu.memory_space<vmem>>, vector<2x1x128xf32>
    %1 = vector.shape_cast %0 : vector<2x1x128xf32> to vector<2x128xf32>
    %cst = arith.constant 0.333333343 : f32
    %2 = vector.broadcast %cst : f32 to vector<2x128xf32>
    %3 = math.powf %1, %2 : vector<2x128xf32>
    %4 = arith.truncf %3 : vector<2x128xf32> to vector<2x128xbf16>
    %c0_2 = arith.constant 0 : index
    %c0_3 = arith.constant 0 : index
    %5 = vector.load %arg2[%c0_2, %c0_3] : memref<128x128xbf16, #tpu.memory_space<vmem>>, vector<128x128xbf16>
    %cst_4 = arith.constant dense<0.000000e+00> : vector<2x128xf32>
    %6 = tpu.matmul %4, %5, %cst_4 {dimension_numbers = #tpu.dot_dimension_numbers<[1], [0], [0], [1], [0, 0, 1, 1], [], []>} : vector<2x128xbf16>, vector<128x128xbf16>, vector<2x128xf32> -> vector<2x128xf32>
    %c0_5 = arith.constant 0 : index
    %c0_6 = arith.constant 0 : index
    %7 = vector.load %arg3[%c0_5, %c0_6] : memref<1x128xf32, #tpu.memory_space<vmem>>, vector<1x128xf32>
    %8 = vector.broadcast %7 : vector<1x128xf32> to vector<2x128xf32>
    %9 = arith.addf %6, %8 : vector<2x128xf32>
    %c0_7 = arith.constant 0 : index
    %c0_8 = arith.constant 0 : index
    %10 = vector.load %arg4[%c0_7, %c0_8] : memref<2x128xf32, #tpu.memory_space<vmem>>, vector<2x128xf32>
    tpu.vector_store %arg4[%c0_7, %c0_8], %9 {strides = array<i32>} : memref<2x128xf32, #tpu.memory_space<vmem>>, vector<2x128xf32>,
    return
  }
  func.func @transform_0(%arg0: i32) -> (i32, i32, i32) {
    %c0_i32 = arith.constant 0 : i32
    %c0_i32_0 = arith.constant 0 : i32
    %c0_i32_1 = arith.constant 0 : i32
    return %arg0, %c0_i32, %c0_i32_0 : i32, i32, i32
  }
  func.func @transform_1(%arg0: i32) -> (i32, i32) {
    %c0_i32 = arith.constant 0 : i32
    %c0_i32_0 = arith.constant 0 : i32
    %c0_i32_1 = arith.constant 0 : i32
    return %c0_i32, %c0_i32_0 : i32, i32
  }
  func.func @transform_2(%arg0: i32) -> (i32, i32) {
    %c0_i32 = arith.constant 0 : i32
    %c0_i32_0 = arith.constant 0 : i32
    %c0_i32_1 = arith.constant 0 : i32
    return %c0_i32, %c0_i32_0 : i32, i32
  }
  func.func @transform_3(%arg0: i32) -> (i32, i32) {
    %c0_i32 = arith.constant 0 : i32
    %c0_i32_0 = arith.constant 0 : i32
    return %arg0, %c0_i32 : i32, i32
  }
}

module attributes {stable_mosaic.version = 11 : i64} {
  func.func @kernel(%arg0: i32, %arg1: memref<1x4x2x72x4xbf16, #tpu.memory_space<vmem>>, %arg2: memref<36x128xbf16, #tpu.memory_space<vmem>>, %arg3: memref<1x128xf32, #tpu.memory_space<vmem>>, %arg4: memref<1x1x128xf32, #tpu.memory_space<vmem>>, %arg5: memref<64x36xbf16, #tpu.memory_space<vmem>>) attributes {dimension_semantics = [#tpu.dimension_semantics<parallel>], iteration_bounds = array<i64: 2>, scalar_prefetch = 0 : i64, scratch_operands = 1 : i64, tpu.core_type = #tpu.core_type<tc>, window_params = [{transform_indices = @transform_0, window_bounds = array<i64: 1, 4, 2, 72, 4>}, {pipeline_mode = #tpu.pipeline_mode<synchronous>, transform_indices = @transform_1, window_bounds = array<i64: 36, 128>}, {pipeline_mode = #tpu.pipeline_mode<synchronous>, transform_indices = @transform_2, window_bounds = array<i64: 1, 128>}, {transform_indices = @transform_3, window_bounds = array<i64: 1, 1, 128>}]} {
    %c0 = arith.constant 0 : index
    %c0_0 = arith.constant 0 : index
    %c0_1 = arith.constant 0 : index
    %c0_2 = arith.constant 0 : index
    %c0_3 = arith.constant 0 : index
    %0 = vector.load %arg1[%c0, %c0_0, %c0_1, %c0_2, %c0_3] : memref<1x4x2x72x4xbf16, #tpu.memory_space<vmem>>, vector<1x1x1x64x4xbf16>
    %1 = vector.shape_cast %0 : vector<1x1x1x64x4xbf16> to vector<64x4xbf16>
    %c0_4 = arith.constant 0 : index
    %c0_5 = arith.constant 0 : index
    %2 = vector.load %arg5[%c0_4, %c0_5] : memref<64x36xbf16, #tpu.memory_space<vmem>>, vector<64x4xbf16>
    tpu.vector_store %arg5[%c0_4, %c0_5], %1 {strides = array<i32>} : memref<64x36xbf16, #tpu.memory_space<vmem>>, vector<64x4xbf16>,
    %c0_6 = arith.constant 0 : index
    %c1 = arith.constant 1 : index
    %c0_7 = arith.constant 0 : index
    %c0_8 = arith.constant 0 : index
    %c0_9 = arith.constant 0 : index
    %3 = vector.load %arg1[%c0_6, %c1, %c0_7, %c0_8, %c0_9] : memref<1x4x2x72x4xbf16, #tpu.memory_space<vmem>>, vector<1x1x1x64x4xbf16>
    %4 = vector.shape_cast %3 : vector<1x1x1x64x4xbf16> to vector<64x4xbf16>
    %c0_10 = arith.constant 0 : index
    %c4 = arith.constant 4 : index
    %5 = vector.load %arg5[%c0_10, %c4] : memref<64x36xbf16, #tpu.memory_space<vmem>>, vector<64x4xbf16>
    tpu.vector_store %arg5[%c0_10, %c4], %4 {strides = array<i32>} : memref<64x36xbf16, #tpu.memory_space<vmem>>, vector<64x4xbf16>,
    %c0_11 = arith.constant 0 : index
    %c0_12 = arith.constant 0 : index
    %c1_13 = arith.constant 1 : index
    %c0_14 = arith.constant 0 : index
    %c0_15 = arith.constant 0 : index
    %6 = vector.load %arg1[%c0_11, %c0_12, %c1_13, %c0_14, %c0_15] : memref<1x4x2x72x4xbf16, #tpu.memory_space<vmem>>, vector<1x1x1x64x4xbf16>
    %7 = vector.shape_cast %6 : vector<1x1x1x64x4xbf16> to vector<64x4xbf16>
    %c0_16 = arith.constant 0 : index
    %c8 = arith.constant 8 : index
    %8 = vector.load %arg5[%c0_16, %c8] : memref<64x36xbf16, #tpu.memory_space<vmem>>, vector<64x4xbf16>
    tpu.vector_store %arg5[%c0_16, %c8], %7 {strides = array<i32>} : memref<64x36xbf16, #tpu.memory_space<vmem>>, vector<64x4xbf16>,
    %c0_17 = arith.constant 0 : index
    %c2 = arith.constant 2 : index
    %c0_18 = arith.constant 0 : index
    %c0_19 = arith.constant 0 : index
    %c0_20 = arith.constant 0 : index
    %9 = vector.load %arg1[%c0_17, %c2, %c0_18, %c0_19, %c0_20] : memref<1x4x2x72x4xbf16, #tpu.memory_space<vmem>>, vector<1x1x1x64x4xbf16>
    %10 = vector.shape_cast %9 : vector<1x1x1x64x4xbf16> to vector<64x4xbf16>
    %c0_21 = arith.constant 0 : index
    %c12 = arith.constant 12 : index
    %11 = vector.load %arg5[%c0_21, %c12] : memref<64x36xbf16, #tpu.memory_space<vmem>>, vector<64x4xbf16>
    tpu.vector_store %arg5[%c0_21, %c12], %10 {strides = array<i32>} : memref<64x36xbf16, #tpu.memory_space<vmem>>, vector<64x4xbf16>,
    %c0_22 = arith.constant 0 : index
    %c3 = arith.constant 3 : index
    %c0_23 = arith.constant 0 : index
    %c0_24 = arith.constant 0 : index
    %c0_25 = arith.constant 0 : index
    %12 = vector.load %arg1[%c0_22, %c3, %c0_23, %c0_24, %c0_25] : memref<1x4x2x72x4xbf16, #tpu.memory_space<vmem>>, vector<1x1x1x64x4xbf16>
    %13 = vector.shape_cast %12 : vector<1x1x1x64x4xbf16> to vector<64x4xbf16>
    %c0_26 = arith.constant 0 : index
    %c16 = arith.constant 16 : index
    %14 = vector.load %arg5[%c0_26, %c16] : memref<64x36xbf16, #tpu.memory_space<vmem>>, vector<64x4xbf16>
    tpu.vector_store %arg5[%c0_26, %c16], %13 {strides = array<i32>} : memref<64x36xbf16, #tpu.memory_space<vmem>>, vector<64x4xbf16>,
    %c0_27 = arith.constant 0 : index
    %c2_28 = arith.constant 2 : index
    %c1_29 = arith.constant 1 : index
    %c0_30 = arith.constant 0 : index
    %c0_31 = arith.constant 0 : index
    %15 = vector.load %arg1[%c0_27, %c2_28, %c1_29, %c0_30, %c0_31] : memref<1x4x2x72x4xbf16, #tpu.memory_space<vmem>>, vector<1x1x1x64x4xbf16>
    %16 = vector.shape_cast %15 : vector<1x1x1x64x4xbf16> to vector<64x4xbf16>
    %c0_32 = arith.constant 0 : index
    %c20 = arith.constant 20 : index
    %17 = vector.load %arg5[%c0_32, %c20] : memref<64x36xbf16, #tpu.memory_space<vmem>>, vector<64x4xbf16>
    tpu.vector_store %arg5[%c0_32, %c20], %16 {strides = array<i32>} : memref<64x36xbf16, #tpu.memory_space<vmem>>, vector<64x4xbf16>,
    %c0_33 = arith.constant 0 : index
    %c0_34 = arith.constant 0 : index
    %c0_35 = arith.constant 0 : index
    %c8_36 = arith.constant 8 : index
    %c0_37 = arith.constant 0 : index
    %18 = vector.load %arg1[%c0_33, %c0_34, %c0_35, %c8_36, %c0_37] : memref<1x4x2x72x4xbf16, #tpu.memory_space<vmem>>, vector<1x1x1x64x4xbf16>
    %19 = vector.shape_cast %18 : vector<1x1x1x64x4xbf16> to vector<64x4xbf16>
    %c0_38 = arith.constant 0 : index
    %c24 = arith.constant 24 : index
    %20 = vector.load %arg5[%c0_38, %c24] : memref<64x36xbf16, #tpu.memory_space<vmem>>, vector<64x4xbf16>
    tpu.vector_store %arg5[%c0_38, %c24], %19 {strides = array<i32>} : memref<64x36xbf16, #tpu.memory_space<vmem>>, vector<64x4xbf16>,
    %c0_39 = arith.constant 0 : index
    %c1_40 = arith.constant 1 : index
    %c0_41 = arith.constant 0 : index
    %c8_42 = arith.constant 8 : index
    %c0_43 = arith.constant 0 : index
    %21 = vector.load %arg1[%c0_39, %c1_40, %c0_41, %c8_42, %c0_43] : memref<1x4x2x72x4xbf16, #tpu.memory_space<vmem>>, vector<1x1x1x64x4xbf16>
    %22 = vector.shape_cast %21 : vector<1x1x1x64x4xbf16> to vector<64x4xbf16>
    %c0_44 = arith.constant 0 : index
    %c28 = arith.constant 28 : index
    %23 = vector.load %arg5[%c0_44, %c28] : memref<64x36xbf16, #tpu.memory_space<vmem>>, vector<64x4xbf16>
    tpu.vector_store %arg5[%c0_44, %c28], %22 {strides = array<i32>} : memref<64x36xbf16, #tpu.memory_space<vmem>>, vector<64x4xbf16>,
    %c0_45 = arith.constant 0 : index
    %c0_46 = arith.constant 0 : index
    %c1_47 = arith.constant 1 : index
    %c8_48 = arith.constant 8 : index
    %c0_49 = arith.constant 0 : index
    %24 = vector.load %arg1[%c0_45, %c0_46, %c1_47, %c8_48, %c0_49] : memref<1x4x2x72x4xbf16, #tpu.memory_space<vmem>>, vector<1x1x1x64x4xbf16>
    %25 = vector.shape_cast %24 : vector<1x1x1x64x4xbf16> to vector<64x4xbf16>
    %c0_50 = arith.constant 0 : index
    %c32 = arith.constant 32 : index
    %26 = vector.load %arg5[%c0_50, %c32] : memref<64x36xbf16, #tpu.memory_space<vmem>>, vector<64x4xbf16>
    tpu.vector_store %arg5[%c0_50, %c32], %25 {strides = array<i32>} : memref<64x36xbf16, #tpu.memory_space<vmem>>, vector<64x4xbf16>,
    %c0_51 = arith.constant 0 : index
    %c0_52 = arith.constant 0 : index
    %27 = vector.load %arg5[%c0_51, %c0_52] : memref<64x36xbf16, #tpu.memory_space<vmem>>, vector<64x36xbf16>
    %c0_53 = arith.constant 0 : index
    %c0_54 = arith.constant 0 : index
    %28 = vector.load %arg2[%c0_53, %c0_54] : memref<36x128xbf16, #tpu.memory_space<vmem>>, vector<36x128xbf16>
    %cst = arith.constant dense<0.000000e+00> : vector<64x128xf32>
    %29 = tpu.matmul %27, %28, %cst {dimension_numbers = #tpu.dot_dimension_numbers<[1], [0], [0], [1], [0, 0, 1, 1], [], []>} : vector<64x36xbf16>, vector<36x128xbf16>, vector<64x128xf32> -> vector<64x128xf32>
    %c0_55 = arith.constant 0 : index
    %c0_56 = arith.constant 0 : index
    %30 = vector.load %arg3[%c0_55, %c0_56] : memref<1x128xf32, #tpu.memory_space<vmem>>, vector<1x128xf32>
    %31 = vector.broadcast %30 : vector<1x128xf32> to vector<64x128xf32>
    %32 = arith.addf %29, %31 : vector<64x128xf32>
    %cst_57 = arith.constant 9.99999997E-7 : f32
    %33 = vector.broadcast %cst_57 : f32 to vector<64x128xf32>
    %34 = arith.maximumf %32, %33 : vector<64x128xf32>
    %35 = arith.mulf %34, %34 : vector<64x128xf32>
    %36 = arith.mulf %35, %34 : vector<64x128xf32>
    %cst_58 = arith.constant 1.562500e-02 : f32
    %37 = vector.broadcast %cst_58 : f32 to vector<1x64xf32>
    %cst_59 = arith.constant dense<0.000000e+00> : vector<1x128xf32>
    %38 = tpu.matmul %37, %36, %cst_59 {dimension_numbers = #tpu.dot_dimension_numbers<[1], [0], [0], [1], [0, 0, 1, 1], [], []>} : vector<1x64xf32>, vector<64x128xf32>, vector<1x128xf32> -> vector<1x128xf32>
    %c0_60 = arith.constant 0 : index
    %c0_61 = arith.constant 0 : index
    %c0_62 = arith.constant 0 : index
    %39 = vector.load %arg4[%c0_60, %c0_61, %c0_62] : memref<1x1x128xf32, #tpu.memory_space<vmem>>, vector<1x1x128xf32>
    %40 = vector.shape_cast %39 : vector<1x1x128xf32> to vector<1x128xf32>
    %41 = vector.shape_cast %38 : vector<1x128xf32> to vector<1x1x128xf32>
    tpu.vector_store %arg4[%c0_60, %c0_61, %c0_62], %41 {strides = array<i32>} : memref<1x1x128xf32, #tpu.memory_space<vmem>>, vector<1x1x128xf32>,
    return
  }
  func.func @transform_0(%arg0: i32) -> (i32, i32, i32, i32, i32) {
    %c0_i32 = arith.constant 0 : i32
    %c0_i32_0 = arith.constant 0 : i32
    %c0_i32_1 = arith.constant 0 : i32
    %c0_i32_2 = arith.constant 0 : i32
    %c0_i32_3 = arith.constant 0 : i32
    return %arg0, %c0_i32, %c0_i32_0, %c0_i32_1, %c0_i32_2 : i32, i32, i32, i32, i32
  }
  func.func @transform_1(%arg0: i32) -> (i32, i32) {
    %c0_i32 = arith.constant 0 : i32
    %c0_i32_0 = arith.constant 0 : i32
    %c0_i32_1 = arith.constant 0 : i32
    return %c0_i32, %c0_i32_0 : i32, i32
  }
  func.func @transform_2(%arg0: i32) -> (i32, i32) {
    %c0_i32 = arith.constant 0 : i32
    %c0_i32_0 = arith.constant 0 : i32
    %c0_i32_1 = arith.constant 0 : i32
    return %c0_i32, %c0_i32_0 : i32, i32
  }
  func.func @transform_3(%arg0: i32) -> (i32, i32, i32) {
    %c0_i32 = arith.constant 0 : i32
    %c0_i32_0 = arith.constant 0 : i32
    %c0_i32_1 = arith.constant 0 : i32
    return %arg0, %c0_i32, %c0_i32_0 : i32, i32, i32
  }
}

</mosaic_0001>

<bundles_post_ra>
// kernel: resnet_gem_forward.3
= control target key start
LH: loop header
LB: loop body
LE: loop exit
PB: predicated region body
PF: predicated region fallthrough
CT: control target
= control target key end

     0   :  { %v274_v1 = vmov 0.0   ;;  %vm275_vm0 = vmmov 0   ;;  %s342_s0 = inlined_call_operand.vmem [shape: f32[2,1,128], index: 0, kind: input, shape index: {}]   ;;  %s343_s1 = inlined_call_operand.vmem [shape: bf16[128,128], index: 1, kind: input, shape index: {}]   ;;  %s344_s2 = inlined_call_operand.vmem [shape: f32[1,128], index: 2, kind: input, shape index: {}]   ;;  %s345_s3 = inlined_call_operand.hbm [shape: f32[2,128], index: 3, kind: output, shape index: {}]  }
   0x1   :  { %v234_v0 = vld [vmem:[%s343_s1] sm:$0xff]   ;;  %175 = vmatprep.subr.bf16.mxu0 %v274_v1  ;;  %v235_v2 = vld [vmem:[%s343_s1 + $0x8] sm:$0xff]   ;;  %191 = vmatprep.mubr.msk.bf16.mxu0 %vm275_vm0, %v274_v1  ;;  %v236_v3 = vld [vmem:[%s343_s1 + $0x10] sm:$0xff]  }
   0x2   :  { %176 = vmatpush3.bf16.msra.mxu0 %v234_v0  ;;  %v16_v4 = vld [vmem:[%s342_s0] sm:$0x1]  ;;  %v17_v5 = vld [vmem:[%s342_s0 + $0x1] sm:$0x1]  ;;  %v237_v7 = vld [vmem:[%s343_s1 + $0x18] sm:$0xff]  }
   0x3   :  { %177 = vmatprep.subr.bf16.mxu0 %v274_v1  ;;  %v197_v6 = vand.u32 2147483647, %v16_v4  ;;  %v215_v8 = vand.u32 2147483647, %v17_v5 }
   0x5   :  { %242 = vlog2.f32 %v197_v6 }
   0x6   :  { %178 = vmatpush3.bf16.msra.mxu0 %v235_v2 }
   0x7   :  { %179 = vmatprep.subr.bf16.mxu0 %v274_v1 }
   0xa   :  { %180 = vmatpush3.bf16.msra.mxu0 %v236_v3 }
   0xb   :  { %181 = vmatprep.subr.bf16.mxu0 %v274_v1 }
   0xc   :  { %8 = vsyncpa [#allocation3], 0  ;;  %244 = vlog2.f32 %v215_v8  ;;  %v238_v9 = vld [vmem:[%s343_s1 + $0x20] sm:$0xff]   ;;  %v239_v10 = vld [vmem:[%s343_s1 + $0x28] sm:$0xff]   ;;  %v201_v17 = vand.u32 2147483648, %v16_v4  ;;  %v219_v18 = vand.u32 2147483648, %v17_v5  ;;  %vm205_vm1 = vweird.f32 %v197_v6 }
   0xd   :  { %v240_v13 = vld [vmem:[%s343_s1 + $0x30] sm:$0xff]   ;;  %v241_v16 = vld [vmem:[%s343_s1 + $0x38] sm:$0xff]   ;;  %vm207_vm2 = vcmp.eq.f32.partialorder %v197_v6, 0.0  ;;  %vm223_vm3 = vweird.f32 %v215_v8  ;;  %vm196_vm4 = vcmp.lt.f32.partialorder %v16_v4, 0.0  ;;  %vm225_vm5 = vcmp.eq.f32.partialorder %v215_v8, 0.0  ;;  %s276_s5 = smov [#allocation2]  }
   0xe   :  { %182 = vmatpush3.bf16.msra.mxu0 %v237_v7  ;;  %vm195_vm6 = vcmp.eq.f32.partialorder %v16_v4, 0.0  ;;  %vm214_vm7 = vcmp.lt.f32.partialorder %v17_v5, 0.0  ;;  %vm198_vm8 = vcmp.eq.f32.partialorder %v197_v6, inf  ;;  %vm213_vm9 = vcmp.eq.f32.partialorder %v17_v5, 0.0  ;;  %v157_v40 = vld [vmem:[%s344_s2] ss:$0 sm:$0xff] }
   0xf   :  { %183 = vmatprep.subr.bf16.mxu0 %v274_v1  ;;  %v243_v11 = vpop.eup %242  ;;  %vm216_vm10 = vcmp.eq.f32.partialorder %v215_v8, inf  ;;  %vm50_vm11 = vcmask 1041409   ;;  %s149_s6 = sshll.u32 %s276_s5, 4  ;;  %s150_s6 = int_to_ptr.vmem [resolvable:$true] %s149_s6 }
  0x10   :  { %v202_v14 = vmul.f32 0.33333334, %v243_v11  ;;  %s250_s7 = scalar_lea.vmem %s150_s6, 32  ;;  %p255_p1 = scmp.lt.s32.totalorder %s150_s6, %s150_s6 }
  0x11   :  { %p251_p0 = scmp.ne.s32.totalorder %s150_s6, %s250_s7  ;;  %p256_p2 = scmp.lt.s32.totalorder %s250_s7, %s250_s7 }
  0x12   :  { %184 = vmatpush3.bf16.msra.mxu0 %v238_v9  ;;  %246 = vpow2.f32 %v202_v14 }
  0x13   :  { %185 = vmatprep.subr.bf16.mxu0 %v274_v1  ;;  %p257_p3 = por %p256_p2, %p255_p1 }
  0x15   :  { %p258_p4 = pnand %p257_p3, %p251_p0 }
  0x16   :  { %v245_v12 = vpop.eup %244  ;;  %186 = vmatpush3.bf16.msra.mxu0 %v239_v10 }
  0x17   :  { %187 = vmatprep.subr.bf16.mxu0 %v274_v1  ;;  %v220_v15 = vmul.f32 0.33333334, %v245_v12 }
  0x19   :  { %248 = vpow2.f32 %v220_v15 }
  0x1a   :  { %188 = vmatpush3.bf16.msra.mxu0 %v240_v13 }
  0x1b   :  { %189 = vmatprep.subr.bf16.mxu0 %v274_v1 }
  0x1c   :  { %v247_v19 = vpop.eup %246 }
  0x1d   :  { %v204_v21 = vor.u32 %v247_v19, %v201_v17 }
  0x1e   :  { %190 = vmatpush3.bf16.msra.mxu0 %v241_v16 }
  0x1f   :  { %v206_v23 = vsel %vm205_vm1, %v16_v4, %v204_v21 }
  0x20   :  { %v209_v24 = vsel %vm207_vm2, %v201_v17, %v206_v23 }
  0x21   :  { %v210_v26 = vsel %vm196_vm4, nan, %v209_v24 }
  0x22   :  { %v211_v28 = vsel %vm195_vm6, 0.0, %v210_v26 }
  0x23   :  { %v249_v20 = vpop.eup %248  ;;  %v212_v30 = vsel %vm198_vm8, inf, %v211_v28 }
  0x24   :  { %v222_v22 = vor.u32 %v249_v20, %v219_v18  ;;  %v20_v33 = vpack.c.bf16 %v212_v30, %v212_v30 }
  0x26   :  { %v224_v25 = vsel %vm223_vm3, %v17_v5, %v222_v22  ;;  %v47_v35 = vunpack.c.l.b16 %v20_v33 }
  0x27   :  { %v227_v27 = vsel %vm225_vm5, %v219_v18, %v224_v25 }
  0x28   :  { %v228_v29 = vsel %vm214_vm7, nan, %v227_v27 }
  0x29   :  { %v229_v31 = vsel %vm213_vm9, 0.0, %v228_v29 }
  0x2a   :  { %v230_v32 = vsel %vm216_vm10, inf, %v229_v31 }
  0x2b   :  { %v21_v34 = vpack.c.bf16 %v230_v32, %v230_v32 }
  0x2d   :  { %v48_v36 = vunpack.c.l.b16 %v21_v34 }
  0x2f   :  { %v49_v37 = vrot.slane %v48_v36, 7 }
  0x31   :  { %v51_v38 = vsel %vm50_vm11, %v49_v37, %v47_v35 }
  0x32   :  { %v52_v39 = vpack.c.b16 %v51_v38, %v51_v38 }
  0x34   :  { %192 = vmatmul.mubr.bf16.vlgmr.msra.gmra.mrb[0].mxu0 %v52_v39 }
 0x107   :  { %v136_v41 = vpop.f32.mrb[0].mxu0 }
 0x108   :  { %v137_v42 = vadd.f32 %v157_v40, %v136_v41  ;;  %v193_v43 = vpop.f32.mrb[1].mxu0 }
 0x109   :  { %v139_v44 = vpop.f32.mrb[2].mxu0 }
 0x10a   :  { %142 = vst [vmem:[#allocation2] sm:$0x3] %v137_v42  ;;  %v194_v45 = vpop.f32.mrb[3].mxu0 }
 0x10b   :  { %261 = shalt.err (!%p258_p4)
}
 0x10c   :  { %s262_s2 = scalar_lea.hbm %s345_s3, 32 }
 0x10d   :  { %p263_p5 = scmp.ne.s32.totalorder %s345_s3, %s262_s2  ;;  %p266_p6 = scmp.lt.u32.totalorder %s262_s2, %s345_s3 }
 0x10f   :  { %p268_p7 = pnand %p266_p6, %p263_p5 }
 0x111   :  { %271 = shalt.err (!%p268_p7)
}
 0x112   :  { %152 = dma.vmem_to_hbm [thread:$0]  %s150_s6, 32, %s345_s3, [#allocation3]  }
 0x113   :  { %272 = dma.done.wait [#allocation3], 32  }
 0x114   :  { %273 = vsyncadd [#allocation3], 4294967264 }
 0x115   :  { %156 = vsyncpa [#allocation3], 1 }

// kernel: resnet_gem_forward.2
= control target key start
LH: loop header
LB: loop body
LE: loop exit
PB: predicated region body
PF: predicated region fallthrough
CT: control target
= control target key end

     0   :  { %s1100_s12 = smov 0   ;;  %s1243_s0 = inlined_call_operand.vmem [shape: bf16[2,4,2,72,4], index: 0, kind: input, shape index: {}]   ;;  %s1244_s1 = inlined_call_operand.vmem [shape: bf16[36,128], index: 1, kind: input, shape index: {}]   ;;  %s1245_s2 = inlined_call_operand.vmem [shape: f32[1,128], index: 2, kind: input, shape index: {}]   ;;  %s1246_s3 = inlined_call_operand.vmem [shape: f32[2,1,128], index: 3, kind: output, shape index: {}]  }
   0x1 LB: > { %s829_s13 = sadd.s32 4294967295, %s1066_s12   ;;  %p833_p0 = scmp.ge.s32.totalorder %s1066_s12, 1  ;;  %s1066_s12 = sphi %s1100_s12, %s13_s12  }
   0x2   : > { %p137_p1 = scmp.lt.s32.totalorder %s1066_s12, 3 }
   0x4   : > { %p138_p2 = pnand %p833_p0, %p137_p1 }
   0x5   : > { %p159_p3 = scmp.lt.s32.totalorder (!%p138_p2), %s829_s13, 1  ;;  %s1068_s18 = smov (!%p138_p2), 4   ;;  %vm200_vm0 = vcmask (!%p138_p2), 31744   ;;  %v1055_v22 = vld [vmem:[%s1244_s1] sm:$0xff] (!%p138_p2)   ;;  %v1057_v24 = vld [vmem:[%s1244_s1 + $0x8] sm:$0xff] (!%p138_p2)   ;;  %vm614_vm1 = vcmask (!%p138_p2), 1041408  }
   0x6   : > { %141 = sbr.rel (%p138_p2) target bundleno = 647 (0x287), region = 32  ;;  %s1069_s19 = smov (!%p138_p2), 8   ;;  %954 = vmatprep.subr.bf16.mxu0 (!%p138_p2), %v1055_v22  ;;  %v1059_v27 = vld [vmem:[%s1244_s1 + $0x10] ss:$0 sps:$4 sm:$0x33] (!%p138_p2)   ;;  %vm246_vm2 = vcmask (!%p138_p2), 64544  }
   0x7   : > { %s1070_s20 = smov (!%p138_p2), 12   ;;  %s1071_s21 = smov (!%p138_p2), 16   ;;  %955 = vmatpush3.bf16.msra.mxu0 (!%p138_p2), %v1055_v22  ;;  %v616_v30 = vsel (!%p138_p2), %vm614_vm1, %v1059_v27, 0  ;;  %vm292_vm3 = vcmask (!%p138_p2), 97344   ;;  %vm338_vm4 = vcmask (!%p138_p2), 130144   ;;  %vm384_vm5 = vcmask (!%p138_p2), 162944  }
   0x8   : > { %s1072_s22 = smov (!%p138_p2), 20   ;;  %s1073_s23 = smov (!%p138_p2), 24   ;;  %956 = vmatprep.subr.bf16.mxu0 (!%p138_p2), %v1057_v24  ;;  %vm430_vm6 = vcmask (!%p138_p2), 195744   ;;  %vm475_vm7 = vcmask (!%p138_p2), 228544   ;;  %vm520_vm8 = vcmask (!%p138_p2), 261344   ;;  %vm565_vm9 = vcmask (!%p138_p2), 294144  }
   0x9   : > { %s1074_s24 = smov (!%p138_p2), 28   ;;  %s1075_s25 = smov (!%p138_p2), 32   ;;  %vm601_vm10 = vcmask (!%p138_p2), 293888   ;;  %vm1077_vm11 = vmmov (!%p138_p2), 0   ;;  %vm707_vm12 = vcmask (!%p138_p2), 523264  }
   0xb   : > { %957 = vmatpush3.bf16.msra.mxu0 (!%p138_p2), %v1057_v24 }
   0xc   : > { %999 = vmatprep.subr.msk.bf16.mxu0 (!%p138_p2), %vm614_vm1, %v1059_v27 }
   0xd   : > { %s1248_s13 = smov (!%p159_p3, %s829_s13), 1 }
   0xe   : > { %s1000_s14 = smul.u32 288, %s1248_s13  ;;  %s166_s9 = scalar_lea.vmem %s1246_s3, %s1248_s13 }
   0xf   : > { %959 = vmatpush3.bf16.msra.mxu0 %v616_v30 }
  0x10   : > { %s1114_s17 = scalar_lea.vmem %s1243_s0, %s1000_s14 }
  0x11   : > { %v1021_v0 = vld [vmem:[%s1114_s17 + $0x48] sm:$0xff]   ;;  %v1023_v2 = vld [vmem:[%s1114_s17 + $0x50] sm:$0xff]   ;;  %v1026_v5 = vld [vmem:[%s1114_s17 + $0x98] sm:$0xff]  }
  0x12   : > { %v1022_v1 = vld [vmem:[%s1114_s17 + $0x24] sm:$0xff]   ;;  %234 = vrot.lane.b32.xlu0 %v1021_v0, %s1068_s18  ;;  %v1024_v3 = vld [vmem:[%s1114_s17 + $0x2c] sm:$0xff]   ;;  %v1027_v6 = vld [vmem:[%s1114_s17 + $0xd8] sm:$0xff]  }
  0x13   : > { %280 = vrot.lane.b32.xlu1 %v1022_v1, %s1069_s19  ;;  %v1025_v4 = vld [vmem:[%s1114_s17 + $0x90] sm:$0xff]   ;;  %v1028_v7 = vld [vmem:[%s1114_s17 + $0xe0] sm:$0xff]   ;;  %v1035_v14 = vld [vmem:[%s1114_s17 + $0x28] sm:$0xff]  }
  0x14   : > { %v1029_v8 = vld [vmem:[%s1114_s17 + $0xb4] sm:$0xff]   ;;  %v1030_v9 = vld [vmem:[%s1114_s17 + $0xbc] sm:$0xff]   ;;  %v1031_v10 = vld [vmem:[%s1114_s17 + $0x4] sm:$0xff]  }
  0x15   : > { %v1032_v11 = vld [vmem:[%s1114_s17 + $0xc] sm:$0xff]   ;;  %v1034_v13 = vld [vmem:[%s1114_s17 + $0x54] sm:$0xff]   ;;  %v1038_v17 = vld [vmem:[%s1114_s17 + $0x60] sm:$0xff]  }
  0x16   : > { %236 = vrot.lane.b32.xlu0 %v1023_v2, %s1068_s18  ;;  %v1033_v12 = vld [vmem:[%s1114_s17 + $0x4c] sm:$0xff]   ;;  %v1036_v15 = vld [vmem:[%s1114_s17 + $0x58] sm:$0xff]   ;;  %v1053_v19 = vld [vmem:[%s1114_s17] sm:$0xff]  }
  0x17   : > { %282 = vrot.lane.b32.xlu1 %v1024_v3, %s1069_s19  ;;  %v1037_v16 = vld [vmem:[%s1114_s17 + $0x30] sm:$0xff]   ;;  %v1040_v20 = vld [vmem:[%s1114_s17 + $0x3c] sm:$0xff]   ;;  %v1054_v21 = vld [vmem:[%s1114_s17 + $0x8] sm:$0xff]   ;;  %201 = vst.msk [vmem:[#allocation2] sm:$0xff] %vm200_vm0, %v1053_v19 }
  0x18   : > { %v1039_v18 = vld [vmem:[%s1114_s17 + $0x34] sm:$0xff]   ;;  %202 = vst.msk [vmem:[#allocation2 + $0x8] sm:$0xff] %vm200_vm0, %v1054_v21  ;;  %v1041_v26 = vld [vmem:[%s1114_s17 + $0xa0] sm:$0xff]   ;;  %v1042_v28 = vld [vmem:[%s1114_s17 + $0xa8] sm:$0xff]  }
  0x19   : > { %v1056_v23 = vld [vmem:[%s1114_s17 + $0x10] sm:$0xff]   ;;  %v1058_v25 = vld [vmem:[%s1114_s17 + $0x18] sm:$0xff]   ;;  %v1043_v29 = vld [vmem:[%s1114_s17 + $0xe8] sm:$0xff]  }
  0x1a   : > { %326 = vrot.lane.b32.xlu0 %v1025_v4, %s1070_s20  ;;  %203 = vst.msk [vmem:[#allocation2 + $0x10] sm:$0xff] %vm200_vm0, %v1056_v23  ;;  %204 = vst.msk [vmem:[#allocation2 + $0x18] sm:$0xff] %vm200_vm0, %v1058_v25  ;;  %v1044_v31 = vld [vmem:[%s1114_s17 + $0xf0] sm:$0xff]   ;;  %v1045_v32 = vld [vmem:[%s1114_s17 + $0xc4] sm:$0xff]  }
  0x1b   : > { %328 = vrot.lane.b32.xlu1 %v1026_v5, %s1070_s20  ;;  %v1046_v33 = vld [vmem:[%s1114_s17 + $0xcc] sm:$0xff]   ;;  %v1047_v34 = vld [vmem:[%s1114_s17 + $0x14] sm:$0xff]   ;;  %v1048_v35 = vld [vmem:[%s1114_s17 + $0x1c] sm:$0xff]  }
  0x1c   : > { %v1049_v36 = vld [vmem:[%s1114_s17 + $0x5c] sm:$0xff]   ;;  %v1050_v37 = vld [vmem:[%s1114_s17 + $0x64] sm:$0xff]  }
  0x1d   : > { %v1051_v38 = vld [vmem:[%s1114_s17 + $0x38] sm:$0xff]   ;;  %v1052_v39 = vld [vmem:[%s1114_s17 + $0x40] sm:$0xff]  }
  0x1e   : > { %372 = vrot.lane.b32.xlu0 %v1027_v6, %s1071_s21 }
  0x1f   : > { %374 = vrot.lane.b32.xlu1 %v1028_v7, %s1071_s21 }
  0x22   : > { %418 = vrot.lane.b32.xlu0 %v1029_v8, %s1072_s22 }
  0x23   : > { %420 = vrot.lane.b32.xlu1 %v1030_v9, %s1072_s22 }
  0x26   : > { %463 = vrot.lane.b32.xlu0 %v1031_v10, %s1073_s23 }
  0x27   : > { %465 = vrot.lane.b32.xlu1 %v1032_v11, %s1073_s23 }
  0x2a   : > { %508 = vrot.lane.b32.xlu0 %v1033_v12, %s1074_s24  ;;  %v1076_v12 = vmov 0.0|0.0  }
  0x2b   : > { %510 = vrot.lane.b32.xlu1 %v1034_v13, %s1074_s24  ;;  %987 = vmatprep.subr.bf16.mxu1 %v1076_v12  ;;  %v1078_v13 = vmov 0.0  }
  0x2c   : > { %984 = vmatprep.mubr.msk.f32.mxu1 %vm1077_vm11, %v1078_v13 }
  0x2e   : > { %553 = vrot.lane.b32.xlu0 %v1035_v14, %s1075_s25  ;;  %v927_v14 = vld [vmem:[%s1245_s2] ss:$0 sm:$0xff] }
  0x2f   : > { %238 = vrot.lane.b32.xlu1 %v1036_v15, %s1068_s18 }
  0x32   : > { %555 = vrot.lane.b32.xlu0 %v1037_v16, %s1075_s25 }
  0x33   : > { %240 = vrot.lane.b32.xlu1 %v1038_v17, %s1068_s18 }
  0x36   : > { %284 = vrot.lane.b32.xlu0 %v1039_v18, %s1069_s19 }
  0x37   : > { %286 = vrot.lane.b32.xlu1 %v1040_v20, %s1069_s19 }
  0x3a   : > { %330 = vrot.lane.b32.xlu0 %v1041_v26, %s1070_s20 }
  0x3b   : > { %332 = vrot.lane.b32.xlu1 %v1042_v28, %s1070_s20 }
  0x3e   : > { %376 = vrot.lane.b32.xlu0 %v1043_v29, %s1071_s21 }
  0x3f   : > { %378 = vrot.lane.b32.xlu1 %v1044_v31, %s1071_s21 }
  0x42   : > { %422 = vrot.lane.b32.xlu0 %v1045_v32, %s1072_s22 }
  0x43   : > { %424 = vrot.lane.b32.xlu1 %v1046_v33, %s1072_s22 }
  0x46   : > { %467 = vrot.lane.b32.xlu0 %v1047_v34, %s1073_s23 }
  0x47   : > { %469 = vrot.lane.b32.xlu1 %v1048_v35, %s1073_s23 }
  0x4a   : > { %512 = vrot.lane.b32.xlu0 %v1049_v36, %s1074_s24 }
  0x4b   : > { %514 = vrot.lane.b32.xlu1 %v1050_v37, %s1074_s24 }
  0x4e   : > { %557 = vrot.lane.b32.xlu0 %v1051_v38, %s1075_s25 }
  0x4f   : > { %559 = vrot.lane.b32.xlu1 %v1052_v39, %s1075_s25 }
  0x84   : > { %v235_v40 = vpop.permute.xlu0 %234 }
  0x85   : > { %247 = vst.msk [vmem:[#allocation2] sm:$0xff] %vm246_vm2, %v235_v40  ;;  %v281_v41 = vpop.permute.xlu1 %280 }
  0x86   : > { %293 = vst.msk [vmem:[#allocation2] sm:$0xff] %vm292_vm3, %v281_v41 }
  0x88   : > { %v237_v42 = vpop.permute.xlu0 %236 }
  0x89   : > { %248 = vst.msk [vmem:[#allocation2 + $0x8] sm:$0xff] %vm246_vm2, %v237_v42  ;;  %v283_v43 = vpop.permute.xlu1 %282 }
  0x8a   : > { %294 = vst.msk [vmem:[#allocation2 + $0x8] sm:$0xff] %vm292_vm3, %v283_v43 }
  0x8c   : > { %v327_v44 = vpop.permute.xlu0 %326 }
  0x8d   : > { %339 = vst.msk [vmem:[#allocation2] sm:$0xff] %vm338_vm4, %v327_v44  ;;  %v329_v45 = vpop.permute.xlu1 %328 }
  0x8e   : > { %340 = vst.msk [vmem:[#allocation2 + $0x8] sm:$0xff] %vm338_vm4, %v329_v45 }
  0x90   : > { %v373_v46 = vpop.permute.xlu0 %372 }
  0x91   : > { %385 = vst.msk [vmem:[#allocation2] sm:$0xff] %vm384_vm5, %v373_v46  ;;  %v375_v47 = vpop.permute.xlu1 %374 }
  0x92   : > { %386 = vst.msk [vmem:[#allocation2 + $0x8] sm:$0xff] %vm384_vm5, %v375_v47 }
  0x94   : > { %v419_v48 = vpop.permute.xlu0 %418 }
  0x95   : > { %431 = vst.msk [vmem:[#allocation2] sm:$0xff] %vm430_vm6, %v419_v48  ;;  %v421_v49 = vpop.permute.xlu1 %420 }
  0x96   : > { %432 = vst.msk [vmem:[#allocation2 + $0x8] sm:$0xff] %vm430_vm6, %v421_v49 }
  0x98   : > { %v464_v50 = vpop.permute.xlu0 %463 }
  0x99   : > { %476 = vst.msk [vmem:[#allocation2] sm:$0xff] %vm475_vm7, %v464_v50  ;;  %v466_v51 = vpop.permute.xlu1 %465 }
  0x9a   : > { %477 = vst.msk [vmem:[#allocation2 + $0x8] sm:$0xff] %vm475_vm7, %v466_v51 }
  0x9c   : > { %v509_v52 = vpop.permute.xlu0 %508 }
  0x9d   : > { %521 = vst.msk [vmem:[#allocation2] sm:$0xff] %vm520_vm8, %v509_v52  ;;  %v511_v53 = vpop.permute.xlu1 %510 }
  0x9e   : > { %522 = vst.msk [vmem:[#allocation2 + $0x8] sm:$0xff] %vm520_vm8, %v511_v53 }
  0xa0   : > { %v554_v54 = vpop.permute.xlu0 %553 }
  0xa1   : > { %566 = vst.msk [vmem:[#allocation2] sm:$0xff] %vm565_vm9, %v554_v54  ;;  %v239_v55 = vpop.permute.xlu1 %238 }
  0xa2   : > { %249 = vst.msk [vmem:[#allocation2 + $0x10] sm:$0xff] %vm246_vm2, %v239_v55 }
  0xa4   : > { %v556_v56 = vpop.permute.xlu0 %555 }
  0xa5   : > { %567 = vst.msk [vmem:[#allocation2 + $0x8] sm:$0xff] %vm565_vm9, %v556_v56  ;;  %v241_v57 = vpop.permute.xlu1 %240 }
  0xa6   : > { %250 = vst.msk [vmem:[#allocation2 + $0x18] sm:$0xff] %vm246_vm2, %v241_v57 }
  0xa8   : > { %v285_v58 = vpop.permute.xlu0 %284  ;;  %v570_v59 = vld [vmem:[#allocation2] sm:$0xff] }
  0xa9   : > { %295 = vst.msk [vmem:[#allocation2 + $0x10] sm:$0xff] %vm292_vm3, %v285_v58  ;;  %v287_v60 = vpop.permute.xlu1 %286  ;;  %960 = vmatprep.mubr.msk.bf16.mxu0 %vm601_vm10, %v570_v59  ;;  %v1079_v59 = vmov 0.015625  }
  0xaa   : > { %296 = vst.msk [vmem:[#allocation2 + $0x18] sm:$0xff] %vm292_vm3, %v287_v60 }
  0xac   : > { %v331_v61 = vpop.permute.xlu0 %330  ;;  %v571_v62 = vld [vmem:[#allocation2 + $0x8] sm:$0xff] }
  0xad   : > { %341 = vst.msk [vmem:[#allocation2 + $0x10] sm:$0xff] %vm338_vm4, %v331_v61  ;;  %v333_v63 = vpop.permute.xlu1 %332  ;;  %961 = vmatmul.mubr.msk.bf16.vlgmr.msra.gmra.mrb[0].mxu0 %vm601_vm10, %v571_v62 }
  0xae   : > { %342 = vst.msk [vmem:[#allocation2 + $0x18] sm:$0xff] %vm338_vm4, %v333_v63 }
  0xb0   : > { %v377_v0 = vpop.permute.xlu0 %376 }
  0xb1   : > { %387 = vst.msk [vmem:[#allocation2 + $0x10] sm:$0xff] %vm384_vm5, %v377_v0  ;;  %v379_v1 = vpop.permute.xlu1 %378 }
  0xb2   : > { %388 = vst.msk [vmem:[#allocation2 + $0x18] sm:$0xff] %vm384_vm5, %v379_v1 }
  0xb4   : > { %v423_v2 = vpop.permute.xlu0 %422 }
  0xb5   : > { %433 = vst.msk [vmem:[#allocation2 + $0x10] sm:$0xff] %vm430_vm6, %v423_v2  ;;  %v425_v3 = vpop.permute.xlu1 %424 }
  0xb6   : > { %434 = vst.msk [vmem:[#allocation2 + $0x18] sm:$0xff] %vm430_vm6, %v425_v3 }
  0xb8   : > { %v468_v4 = vpop.permute.xlu0 %467 }
  0xb9   : > { %478 = vst.msk [vmem:[#allocation2 + $0x10] sm:$0xff] %vm475_vm7, %v468_v4  ;;  %v470_v5 = vpop.permute.xlu1 %469 }
  0xba   : > { %479 = vst.msk [vmem:[#allocation2 + $0x18] sm:$0xff] %vm475_vm7, %v470_v5 }
  0xbc   : > { %v513_v6 = vpop.permute.xlu0 %512 }
  0xbd   : > { %523 = vst.msk [vmem:[#allocation2 + $0x10] sm:$0xff] %vm520_vm8, %v513_v6  ;;  %v515_v7 = vpop.permute.xlu1 %514 }
  0xbe   : > { %524 = vst.msk [vmem:[#allocation2 + $0x18] sm:$0xff] %vm520_vm8, %v515_v7 }
  0xc0   : > { %v558_v8 = vpop.permute.xlu0 %557 }
  0xc1   : > { %568 = vst.msk [vmem:[#allocation2 + $0x10] sm:$0xff] %vm565_vm9, %v558_v8  ;;  %v560_v9 = vpop.permute.xlu1 %559 }
  0xc2   : > { %569 = vst.msk [vmem:[#allocation2 + $0x18] sm:$0xff] %vm565_vm9, %v560_v9 }
  0xc8   : > { %v572_v10 = vld [vmem:[#allocation2 + $0x10] sm:$0xff] }
  0xc9   : > { %964 = vmatprep.mubr.msk.bf16.mxu0 %vm601_vm10, %v572_v10  ;;  %v573_v11 = vld [vmem:[#allocation2 + $0x18] sm:$0xff] }
  0xca   : > { %965 = vmatmul.mubr.msk.bf16.gmra.mrb[4].mxu0 %vm601_vm10, %v573_v11 }
 0x180   : > { %v962_v15 = vpop.f32.mrb[0].mxu0 }
 0x181   : > { %v661_v16 = vadd.f32 %v962_v15, %v927_v14  ;;  %v652_v17 = vpop.f32.mrb[1].mxu0 }
 0x182   : > { %v653_v18 = vadd.f32 %v927_v14, %v652_v17  ;;  %v963_v19 = vpop.f32.mrb[2].mxu0 }
 0x183   : > { %v685_v20 = vmax.f32 %v661_v16, 1e-06  ;;  %v664_v21 = vadd.f32 %v963_v19, %v927_v14  ;;  %v655_v22 = vpop.f32.mrb[3].mxu0 }
 0x184   : > { %v683_v23 = vmax.f32 %v653_v18, 1e-06  ;;  %v656_v24 = vadd.f32 %v927_v14, %v655_v22 }
 0x185   : > { %v693_v25 = vmul.f32 %v685_v20, %v685_v20  ;;  %v686_v26 = vmax.f32 %v664_v21, 1e-06 }
 0x186   : > { %v691_v27 = vmul.f32 %v683_v23, %v683_v23  ;;  %v684_v28 = vmax.f32 %v656_v24, 1e-06 }
 0x187   : > { %v694_v29 = vmul.f32 %v686_v26, %v686_v26  ;;  %v701_v31 = vmul.f32 %v693_v25, %v685_v20 }
 0x188   : > { %v692_v30 = vmul.f32 %v684_v28, %v684_v28  ;;  %v699_v33 = vmul.f32 %v691_v27, %v683_v23 }
 0x189   : > { %v702_v32 = vmul.f32 %v694_v29, %v686_v26 }
 0x18a   : > { %v700_v34 = vmul.f32 %v692_v30, %v684_v28 }
 0x18b   : > { %v991_v35 = vpack.c.bf16 %v702_v32, %v701_v31 }
 0x18c   : > { %v988_v36 = vpack.c.bf16 %v700_v34, %v699_v33 }
 0x18e   : > { %989 = vmatpush3.bf16.msra.mxu1 %v988_v36 }
 0x18f   : > { %990 = vmatprep.subr.bf16.mxu1 %v1076_v12 }
 0x192   : > { %992 = vmatpush3.bf16.msra.mxu1 %v991_v35 }
 0x193   : > { %993 = vmatprep.subr.bf16.mxu1 %v1076_v12 }
 0x19d   : > { %v966_v37 = vpop.f32.mrb[4].mxu0 }
 0x19e   : > { %v677_v38 = vadd.f32 %v966_v37, %v927_v14  ;;  %v668_v39 = vpop.f32.mrb[5].mxu0 }
 0x19f   : > { %v669_v40 = vadd.f32 %v927_v14, %v668_v39  ;;  %v967_v41 = vpop.f32.mrb[6].mxu0 }
 0x1a0   : > { %v689_v42 = vmax.f32 %v677_v38, 1e-06  ;;  %v680_v43 = vadd.f32 %v967_v41, %v927_v14  ;;  %v671_v44 = vpop.f32.mrb[7].mxu0 }
 0x1a1   : > { %v687_v45 = vmax.f32 %v669_v40, 1e-06  ;;  %v672_v46 = vadd.f32 %v927_v14, %v671_v44 }
 0x1a2   : > { %v697_v47 = vmul.f32 %v689_v42, %v689_v42  ;;  %v690_v48 = vmax.f32 %v680_v43, 1e-06 }
 0x1a3   : > { %v695_v49 = vmul.f32 %v687_v45, %v687_v45  ;;  %v688_v50 = vmax.f32 %v672_v46, 1e-06 }
 0x1a4   : > { %v698_v51 = vmul.f32 %v690_v48, %v690_v48  ;;  %v705_v53 = vmul.f32 %v697_v47, %v689_v42 }
 0x1a5   : > { %v696_v52 = vmul.f32 %v688_v50, %v688_v50  ;;  %v703_v55 = vmul.f32 %v695_v49, %v687_v45 }
 0x1a6   : > { %v706_v54 = vmul.f32 %v698_v51, %v690_v48 }
 0x1a7   : > { %v704_v56 = vmul.f32 %v696_v52, %v688_v50 }
 0x1a8   : > { %v997_v57 = vpack.c.bf16 %v706_v54, %v705_v53 }
 0x1a9   : > { %v994_v58 = vpack.c.bf16 %v704_v56, %v703_v55 }
 0x1ab   : > { %995 = vmatpush3.bf16.msra.mxu1 %v994_v58 }
 0x1ac   : > { %996 = vmatprep.subr.bf16.mxu1 %v1076_v12 }
 0x1af   : > { %998 = vmatpush3.bf16.msra.mxu1 %v997_v57 }
 0x1b2   : > { %985 = vmatmul.mubr.msk.f32.vlgmr.msra.gmra.mrb[0].mxu1 %vm707_vm12, %v1079_v59 }
 0x285   : > { %v777_v60 = vpop.f32.mrb[0].mxu1 }
 0x286   : > { %781 = vst [vmem:[%s166_s9] sm:$0x1] %v777_v60  ;;  %v986_v61 = vpop.f32.mrb[1].mxu1 }
 0x287 PF: > { %s13_s12 = sadd.s32 1, %s1066_s12  }
 0x288   : > { %p10_p4 = scmp.ge.s32.totalorder %s13_s12, 4  }
 0x28a   :  { %12 = sbr.rel (!%p10_p4) target bundleno = 1 (0x1), region = 67 }

</bundles_post_ra>
